<compile_context>
chip_gen: v6e
topology: v6e:2x2x1
jax: 0.10.0
libtpu: 0.0.40
codegen_flags: <defaults>
</compile_context>

<pallas_src>
import functools

import jax
import jax.numpy as jnp
from jax.experimental import pallas as pl
from jax.experimental.pallas import tpu as pltpu

# ---- module constants (mirroring the PyTorch file) -------------------------
BLOCK_SIZE = 64            # block_size
N_EMBD = 192               # n_embd
GRAVITY_STRENGTH = 5.25    # default_gravity_strength
GRAVITY_ON = True          # default_gravity_on
PARAM_BATCH = 32           # batch_size used for default_gravity_target
DROPOUT = 0.1              # nn.Dropout(0.1) -- identity in eval mode
LANE = 128                 # TPU lane width; Q/K/V column blocks padded to this
# TODO(synk): nn.Dropout is implemented as eval-mode identity (no RNG drop).


# ---------------------------------------------------------------------------
# Pallas kernel: one grid step == one batch element.
# ---------------------------------------------------------------------------
def _head_kernel(x_ref, wqkv_ref, bias_ref, o_ref):
    """
    x_ref:    (T, C)       f32  (cast to bf16 in-kernel)
    wqkv_ref: (C, 3*LANE)  bf16 (Q|K|V blocks each zero-padded to 128 lanes;
                                 1/sqrt(H) folded into the Q block)
    bias_ref: (T, T)       f32  (causal -1e30 mask + optional gravity bias)
    o_ref:    (T, LANE)    f32  (valid data in lanes 0..H-1)
    """
    x = x_ref[...].astype(jnp.bfloat16)                          # (T, C)
    wqkv = wqkv_ref[...]                                         # (C, 384)
    bias = bias_ref[...]                                         # (T, T)

    # Fused QKV projection, f32 accumulation on the MXU.
    qkv = jnp.dot(x, wqkv, preferred_element_type=jnp.float32)   # (T, 384)

    # Lane-aligned slices (each starts on a 128-lane boundary).
    q = qkv[:, 0 * LANE:1 * LANE].astype(jnp.bfloat16)           # (T, 128)
    k = qkv[:, 1 * LANE:2 * LANE].astype(jnp.bfloat16)           # (T, 128)
    v = qkv[:, 2 * LANE:3 * LANE].astype(jnp.bfloat16)           # (T, 128)

    # q @ k^T without materializing a transpose (contract the last dims).
    w = jax.lax.dot_general(
        q, k,
        dimension_numbers=(((1,), (1,)), ((), ())),
        preferred_element_type=jnp.float32)                      # (T, T) f32
    w = w + bias                                                 # mask + gravity

    # softmax over last axis (f32 elementwise; exp + approx recip on the EUP).
    m = jnp.max(w, axis=-1, keepdims=True)
    e = jnp.exp(w - m)
    p = e * pl.reciprocal(jnp.sum(e, axis=-1, keepdims=True), approx=True)

    # (dropout is identity in eval mode)
    out = jnp.dot(p.astype(jnp.bfloat16), v,
                  preferred_element_type=jnp.float32)            # (T, 128)
    o_ref[...] = out.astype(o_ref.dtype)                         # lane-dense store


# ---------------------------------------------------------------------------
# One-time init precompute (hoisted out of the per-call path).
# ---------------------------------------------------------------------------
def compute_gravity_term(T, gravity_target, gravity_strength):
    """Gravity term of shape (T, 1), matching Head.compute_gravity_term."""
    g = gravity_target.reshape(-1).astype(jnp.float32)           # (N,)
    positions = jnp.arange(T, dtype=jnp.float32)                 # (T,)
    dist_sq = (positions[:, None] - g[None, :]) ** 2             # (T, N)
    denom = jnp.sum(dist_sq + 1e-6, axis=1, keepdims=True)       # (T, 1)
    return -gravity_strength / denom                             # (T, 1)


def init_head_statics(wq, wk, wv, gravity_target, gravity_strength,
                      head_size, seq_len):
    """Build fused+padded bf16 Wqkv and the two (T, T) additive bias variants."""
    C, H = wq.shape
    scale = jnp.float32(H) ** -0.5

    wqkv = jnp.zeros((C, 3 * LANE), jnp.float32)
    wqkv = wqkv.at[:, 0:H].set(wq * scale)                       # Q (scaled)
    wqkv = wqkv.at[:, LANE:LANE + H].set(wk)                     # K
    wqkv = wqkv.at[:, 2 * LANE:2 * LANE + H].set(wv)             # V
    wqkv = wqkv.astype(jnp.bfloat16)

    row = jnp.arange(seq_len, dtype=jnp.int32)[:, None]
    col = jnp.arange(seq_len, dtype=jnp.int32)[None, :]
    causal = jnp.where(col <= row, jnp.float32(0.0), jnp.float32(-1e30))  # (T, T)

    grav = compute_gravity_term(seq_len, gravity_target, gravity_strength)  # (T, 1)
    bias_no_grav = causal
    bias_grav = causal + grav                                    # (T, T)
    return wqkv, bias_no_grav, bias_grav


# ---------------------------------------------------------------------------
# Per-call forward.
# ---------------------------------------------------------------------------
@functools.partial(jax.jit, static_argnames=("head_size",))
def head_forward(x, wqkv, bias, *, head_size):
    """x: (B, T, C) f32; wqkv: (C, 3*LANE) bf16; bias: (T, T) f32.

    Returns (B, T, head_size) f32.
    """
    B, T, C = x.shape
    out_pad = pl.pallas_call(
        _head_kernel,
        out_shape=jax.ShapeDtypeStruct((B, T, LANE), jnp.float32),
        grid=(B,),
        in_specs=[
            pl.BlockSpec((None, T, C), lambda b: (b, 0, 0)),      # x, one batch row
            pl.BlockSpec((C, 3 * LANE), lambda b: (0, 0)),        # resident weights
            pl.BlockSpec((T, T), lambda b: (0, 0)),               # resident bias
        ],
        out_specs=pl.BlockSpec((None, T, LANE), lambda b: (b, 0, 0)),
        compiler_params=pltpu.CompilerParams(
            dimension_semantics=("parallel",)),                   # megacore on v7x
    )(x, wqkv, bias)
    return out_pad[:, :, :head_size]


# ---------------------------------------------------------------------------
# Demo / smoke test
# ---------------------------------------------------------------------------
if __name__ == "__main__":
    head_size = 32
    B, T, C = 2, BLOCK_SIZE, N_EMBD   # small batch, full block, n_embd

    key = jax.random.PRNGKey(0)
    kx, kq, kk, kv, kcoin = jax.random.split(key, 5)

    # inputs
    x = jax.random.normal(kx, (B, T, C), dtype=jnp.float32)

    # deterministic parameter init (nn.Linear(n_embd, head_size, bias=False)
    # has weight (head_size, n_embd); we store the transpose (n_embd, head_size)).
    wscale = 1.0 / (C ** 0.5)
    wq = jax.random.uniform(kq, (C, head_size), jnp.float32, -wscale, wscale)
    wk = jax.random.uniform(kk, (C, head_size), jnp.float32, -wscale, wscale)
    wv = jax.random.uniform(kv, (C, head_size), jnp.float32, -wscale, wscale)

    # gravity target parameter: full((32, 64, 64), block_size // 2)
    gravity_target = jnp.full(
        (PARAM_BATCH, BLOCK_SIZE, BLOCK_SIZE), BLOCK_SIZE // 2, dtype=jnp.float32)

    # one-time init-style precompute (fused weights, mask, gravity term)
    wqkv, bias_no_grav, bias_grav = init_head_statics(
        wq, wk, wv, gravity_target, GRAVITY_STRENGTH, head_size, T)

    # forward-time coin flip (torch.rand(1) < 0.5) -- replicated deterministically.
    # TODO(synk): original uses an un-seeded torch.rand; here it is a fixed PRNGKey.
    coin = jax.random.uniform(kcoin, ()) < 0.5
    apply_gravity = jnp.logical_and(jnp.asarray(GRAVITY_ON), coin)
    bias = jnp.where(apply_gravity, bias_grav, bias_no_grav)     # (T, T)

    out = head_forward(x, wqkv, bias, head_size=head_size)
    out = jax.block_until_ready(out)

    # reference check in plain f32 JAX (same math, no Pallas).
    grav = compute_gravity_term(T, gravity_target, GRAVITY_STRENGTH)  # (T, 1)
    grav_bias = jnp.where(apply_gravity, grav, jnp.zeros_like(grav))
    q = x @ wq
    k_ = x @ wk
    v = x @ wv
    w = (q @ jnp.swapaxes(k_, -1, -2)) * (head_size ** -0.5) + grav_bias[None]
    mask = jnp.tril(jnp.ones((T, T), dtype=bool))
    w = jnp.where(mask, w, -jnp.inf)
    w = jax.nn.softmax(w, axis=-1)
    ref = w @ v

    assert out.shape == (B, T, head_size)
    # bf16 MXU operands (f32 accumulation) -> compare at bf16-level tolerance.
    assert jnp.allclose(out, ref, atol=2e-2, rtol=2e-2), float(
        jnp.max(jnp.abs(out - ref))
    )

    print("KERNEL_OK")
</pallas_src>

<mosaic_0001>
module attributes {stable_mosaic.version = 11 : i64} {
  func.func @_head_kernel(%arg0: i32, %arg1: memref<1x64x192xf32, #tpu.memory_space<vmem>>, %arg2: memref<192x384xbf16, #tpu.memory_space<vmem>>, %arg3: memref<64x64xf32, #tpu.memory_space<vmem>>, %arg4: memref<1x64x128xf32, #tpu.memory_space<vmem>>) attributes {dimension_semantics = [#tpu.dimension_semantics<parallel>], iteration_bounds = array<i64: 2>, scalar_prefetch = 0 : i64, scratch_operands = 0 : i64, tpu.core_type = #tpu.core_type<tc>, window_params = [{transform_indices = @transform_0, window_bounds = array<i64: 1, 64, 192>}, {pipeline_mode = #tpu.pipeline_mode<synchronous>, transform_indices = @transform_1, window_bounds = array<i64: 192, 384>}, {pipeline_mode = #tpu.pipeline_mode<synchronous>, transform_indices = @transform_2, window_bounds = array<i64: 64, 64>}, {transform_indices = @transform_3, window_bounds = array<i64: 1, 64, 128>}]} {
    %c0 = arith.constant 0 : index
    %c0_0 = arith.constant 0 : index
    %c0_1 = arith.constant 0 : index
    %0 = vector.load %arg1[%c0, %c0_0, %c0_1] : memref<1x64x192xf32, #tpu.memory_space<vmem>>, vector<1x64x192xf32>
    %1 = vector.shape_cast %0 : vector<1x64x192xf32> to vector<64x192xf32>
    %2 = arith.truncf %1 : vector<64x192xf32> to vector<64x192xbf16>
    %c0_2 = arith.constant 0 : index
    %c0_3 = arith.constant 0 : index
    %3 = vector.load %arg2[%c0_2, %c0_3] : memref<192x384xbf16, #tpu.memory_space<vmem>>, vector<192x384xbf16>
    %c0_4 = arith.constant 0 : index
    %c0_5 = arith.constant 0 : index
    %4 = vector.load %arg3[%c0_4, %c0_5] : memref<64x64xf32, #tpu.memory_space<vmem>>, vector<64x64xf32>
    %cst = arith.constant dense<0.000000e+00> : vector<64x384xf32>
    %5 = tpu.matmul %2, %3, %cst {dimension_numbers = #tpu.dot_dimension_numbers<[1], [0], [0], [1], [0, 0, 1, 1], [], []>} : vector<64x192xbf16>, vector<192x384xbf16>, vector<64x384xf32> -> vector<64x384xf32>
    %6 = vector.extract_strided_slice %5 {offsets = [0, 0], sizes = [64, 128], strides = [1, 1]} : vector<64x384xf32> to vector<64x128xf32>
    %7 = arith.truncf %6 : vector<64x128xf32> to vector<64x128xbf16>
    %8 = vector.extract_strided_slice %5 {offsets = [0, 128], sizes = [64, 128], strides = [1, 1]} : vector<64x384xf32> to vector<64x128xf32>
    %9 = arith.truncf %8 : vector<64x128xf32> to vector<64x128xbf16>
    %10 = vector.extract_strided_slice %5 {offsets = [0, 256], sizes = [64, 128], strides = [1, 1]} : vector<64x384xf32> to vector<64x128xf32>
    %11 = arith.truncf %10 : vector<64x128xf32> to vector<64x128xbf16>
    %cst_6 = arith.constant dense<0.000000e+00> : vector<64x64xf32>
    %12 = tpu.matmul %7, %9, %cst_6 {dimension_numbers = #tpu.dot_dimension_numbers<[1], [1], [0], [0], [0, 0, 1, 0], [], []>} : vector<64x128xbf16>, vector<64x128xbf16>, vector<64x64xf32> -> vector<64x64xf32>
    %13 = arith.addf %12, %4 : vector<64x64xf32>
    %cst_7 = arith.constant dense<0xFF800000> : vector<64xf32>
    %14 = vector.multi_reduction <maximumf>, %13, %cst_7 [1] : vector<64x64xf32> to vector<64xf32>
    %15 = vector.shape_cast %14 : vector<64xf32> to vector<64x1xf32>
    %16 = vector.broadcast %15 : vector<64x1xf32> to vector<64x64xf32>
    %17 = arith.subf %13, %16 : vector<64x64xf32>
    %18 = math.exp %17 : vector<64x64xf32>
    %cst_8 = arith.constant dense<0.000000e+00> : vector<64xf32>
    %19 = vector.multi_reduction <add>, %18, %cst_8 [1] : vector<64x64xf32> to vector<64xf32>
    %20 = vector.shape_cast %19 : vector<64xf32> to vector<64x1xf32>
    %21 = tpu.reciprocal %20 {approx = true} : vector<64x1xf32> -> vector<64x1xf32>
    %22 = vector.broadcast %21 : vector<64x1xf32> to vector<64x64xf32>
    %23 = arith.mulf %18, %22 : vector<64x64xf32>
    %24 = arith.truncf %23 : vector<64x64xf32> to vector<64x64xbf16>
    %cst_9 = arith.constant dense<0.000000e+00> : vector<64x128xf32>
    %25 = tpu.matmul %24, %11, %cst_9 {dimension_numbers = #tpu.dot_dimension_numbers<[1], [0], [0], [1], [0, 0, 1, 1], [], []>} : vector<64x64xbf16>, vector<64x128xbf16>, vector<64x128xf32> -> vector<64x128xf32>
    %c0_10 = arith.constant 0 : index
    %c0_11 = arith.constant 0 : index
    %c0_12 = arith.constant 0 : index
    %26 = vector.load %arg4[%c0_10, %c0_11, %c0_12] : memref<1x64x128xf32, #tpu.memory_space<vmem>>, vector<1x64x128xf32>
    %27 = vector.shape_cast %26 : vector<1x64x128xf32> to vector<64x128xf32>
    %28 = vector.shape_cast %25 : vector<64x128xf32> to vector<1x64x128xf32>
    tpu.vector_store %arg4[%c0_10, %c0_11, %c0_12], %28 {strides = array<i32>} : memref<1x64x128xf32, #tpu.memory_space<vmem>>, vector<1x64x128xf32>,
    return
  }
  func.func @transform_0(%arg0: i32) -> (i32, i32, i32) {
    %c0_i32 = arith.constant 0 : i32
    %c0_i32_0 = arith.constant 0 : i32
    %c0_i32_1 = arith.constant 0 : i32
    return %arg0, %c0_i32, %c0_i32_0 : i32, i32, i32
  }
  func.func @transform_1(%arg0: i32) -> (i32, i32) {
    %c0_i32 = arith.constant 0 : i32
    %c0_i32_0 = arith.constant 0 : i32
    %c0_i32_1 = arith.constant 0 : i32
    return %c0_i32, %c0_i32_0 : i32, i32
  }
  func.func @transform_2(%arg0: i32) -> (i32, i32) {
    %c0_i32 = arith.constant 0 : i32
    %c0_i32_0 = arith.constant 0 : i32
    %c0_i32_1 = arith.constant 0 : i32
    return %c0_i32, %c0_i32_0 : i32, i32
  }
  func.func @transform_3(%arg0: i32) -> (i32, i32, i32) {
    %c0_i32 = arith.constant 0 : i32
    %c0_i32_0 = arith.constant 0 : i32
    %c0_i32_1 = arith.constant 0 : i32
    return %arg0, %c0_i32, %c0_i32_0 : i32, i32, i32
  }
}

</mosaic_0001>

<bundles_post_ra>
// kernel: head_forward.1
= control target key start
LH: loop header
LB: loop body
LE: loop exit
PB: predicated region body
PF: predicated region fallthrough
CT: control target
= control target key end

     0   :  { %8 = vsyncpa [#allocation3], 0  ;;  %s1642_s0 = inlined_call_operand.hbm [shape: f32[2,64,192], index: 0, kind: input, shape index: {}]   ;;  %s1643_s1 = inlined_call_operand.hbm [shape: bf16[192,384], index: 1, kind: input, shape index: {}]   ;;  %s1644_s2 = inlined_call_operand.hbm [shape: f32[64,64], index: 2, kind: input, shape index: {}]   ;;  %s1645_s3 = inlined_call_operand.vmem [shape: f32[2,64,128], index: 3, kind: output, shape index: {}]  }
   0x1   :  { %10 = vsyncpa [#allocation3 + $0x1], 0 }
   0x2   :  { %11 = vsyncpa [#allocation5], 0  ;;  %s1395_s12 = smov 0   ;;  %s1397_s13 = smov 0  }
   0x3   :  { %s1399_s14 = smov 0   ;;  %s1401_s15 = smov 0  }
   0x4 LB: > { %s1414_s16 = sadd.s32 4294967295, %s1363_s15   ;;  %p37_p0 = scmp.ne.s32.totalorder %s1355_s13, %s1351_s12  ;;  %s1363_s15 = sphi %s1401_s15, %s1660_s15   ;;  %s1359_s14 = sphi %s1399_s14, %s1659_s14   ;;  %s1355_s13 = sphi %s1397_s13, %s1658_s13   ;;  %s1351_s12 = sphi %s1395_s12, %s1657_s12  }
   0x5   : > { %p1646_p1 = scmp.eq.s32.totalorder %s1414_s16, 0  ;;  %p985_p2 = scmp.ge.s32.totalorder %s1363_s15, 1 }
   0x6   : > { %p116_p3 = scmp.lt.s32.totalorder %s1363_s15, 3  ;;  %s1365_s19 = smov [#allocation4]  }
   0x7   : > { %p1422_p4 = por %p1646_p1, %p37_p0  ;;  %s128_s20 = sshll.u32 %s1365_s19, 4  ;;  %s129_s20 = int_to_ptr.vmem [resolvable:$true] %s128_s20 }
   0x8   : > { %p1426_p5 = pnand %p985_p2, %p116_p3  ;;  %s1366_s22 = smov [#allocation6]  }
   0x9   : > { %s1649_s17 = scalar_select %p1422_p4, 1, 0 }
   0xa   : > { %s1650_s18 = scalar_select %p1426_p5, 1, 0 }
   0xb   : > { %p1108_p6 = pneg %p1426_p5  ;;  %s141_s23 = sshll.u32 %s1366_s22, 4  ;;  %s142_s23 = int_to_ptr.vmem [resolvable:$true] %s141_s23 }
   0xc   : > { %s1256_s24 = scalar_lea.vmem %s129_s20, 4608  ;;  %p1264_p12 = scmp.lt.s32.totalorder %s129_s20, %s129_s20 }
   0xd   : > { %p1434_p7 = pnand %p1108_p6, %p1646_p1  ;;  %p1257_p9 = scmp.ne.s32.totalorder %s129_s20, %s1256_s24 }
   0xe   : > { %p1265_p13 = scmp.lt.s32.totalorder %s1256_s24, %s1256_s24 }
   0xf   : > { %p1247_p8 = pneg %p1434_p7 }
  0x10   : > { %p1266_p0 = por %p1265_p13, %p1264_p12 }
  0x11   : > { %p1259_p10 = pnand %p1257_p9, %p1247_p8 }
  0x13   : > { %p1260_p11 = pneg %p1259_p10 }
  0x15   : > { %p1267_p2 = pnand %p1266_p0, %p1260_p11 }
  0x17   : > { %1270 = shalt.err (!%p1267_p2)
}
  0x18   : > { %s1367_s25 = smov 192   ;;  %s1368_s26 = smov 12  }
  0x19   : > { %1111 = dma.hbm_to_vmem [thread:$0]  (!%p1434_p7), %s1643_s1, 4608, %s129_s20, [#allocation5], %s1367_s25, %s1367_s25, %s1368_s26  }
  0x1a   : > { %s1282_s29 = scalar_lea.vmem %s142_s23, 1024  ;;  %p1290_p10 = scmp.lt.s32.totalorder %s142_s23, %s142_s23 }
  0x1b   : > { %p1283_p3 = scmp.ne.s32.totalorder %s142_s23, %s1282_s29  ;;  %p1291_p1 = scmp.lt.s32.totalorder %s1282_s29, %s1282_s29 }
  0x1d   : > { %p1285_p6 = pnand %p1283_p3, %p1247_p8  ;;  %p1292_p12 = por %p1291_p1, %p1290_p10 }
  0x1f   : > { %p1286_p9 = pneg %p1285_p6 }
  0x21   : > { %p1293_p11 = pnand %p1292_p12, %p1286_p9 }
  0x23   : > { %1296 = shalt.err (!%p1293_p11)
}
  0x24   : > { %s1369_s30 = smov 128   ;;  %s1370_s4 = smov 8  }
  0x25   : > { %1114 = dma.hbm_to_vmem [thread:$0]  (!%p1434_p7), %s1644_s2, 1024, %s142_s23, [#allocation5], %s1369_s30, %s1369_s30, %s1370_s4  }
  0x26   : > { %s1457_s7 = sadd.s32 1, %s1363_s15   ;;  %s24_s9 = sadd.s32 1, %s1359_s14 }
  0x27   : > { %s21_s8 = ssub.s32 %s1363_s15, %s1457_s7  ;;  %p31_p8 = scmp.ne.s32.totalorder %s1359_s14, %s1355_s13 }
  0x28   : > { %p22_p1 = scmp.eq.s32.totalorder %s21_s8, 0  ;;  %p32_p13 = scmp.eq.s32.totalorder %s1363_s15, 0 }
  0x29   : > { %p1121_p2 = scmp.lt.s32.totalorder %s1363_s15, 2  ;;  %s155_s11 = sand.u32 1, %s1359_s14  }
  0x2a   : > { %s1466_s10 = scalar_select %p22_p1, %s1359_s14, %s24_s9  }
  0x2b   : > { %p33_p0 = por %p32_p13, %p31_p8  ;;  %s1048_s12 = sshll.u32 %s1363_s15, 11 }
  0x2c   : > { %s989_s19 = sshll.u32 %s155_s11, 7  ;;  %s1474_s22 = scalar_lea.hbm %s1642_s0, %s1048_s12 }
  0x2d   : > { %s159_s23 = scalar_lea.vmem [#allocation2], %s989_s19  ;;  %p1476_p7 = pnand %p1121_p2, %p33_p0 }
  0x2e   : > { %s166_s24 = sshll.u32 %s159_s23, 4  ;;  %s1482_s26 = scalar_lea.sflag [#allocation3], %s155_s11  ;;  %s1480_s24 = int_to_ptr.vmem [resolvable:$true] %s166_s24 }
  0x2f   : > { %s1297_s15 = scalar_lea.hbm %s1474_s22, 2048  ;;  %p1299_p6 = pneg %p1476_p7 }
  0x30   : > { %p1298_p3 = scmp.ne.s32.totalorder %s1474_s22, %s1297_s15  ;;  %s1302_s29 = scalar_lea.hbm %s1642_s0, 4096 }
  0x31   : > { %p1303_p12 = scmp.lt.s32.totalorder %s1474_s22, %s1642_s0  ;;  %p1304_p11 = scmp.lt.s32.totalorder %s1302_s29, %s1297_s15 }
  0x32   : > { %p1300_p9 = pnand %p1299_p6, %p1298_p3 }
  0x33   : > { %p1305_p1 = por %p1304_p11, %p1303_p12 }
  0x34   : > { %p1301_p10 = pneg %p1300_p9 }
  0x36   : > { %p1306_p8 = pnand %p1305_p1, %p1301_p10 }
  0x38   : > { %1309 = shalt.err (!%p1306_p8)
}
  0x39   : > { %s1310_s5 = scalar_lea.vmem %s1480_s24, 2048  ;;  %s1371_s6 = smov [#allocation2]  }
  0x3a   : > { %p1311_p13 = scmp.ne.s32.totalorder %s1480_s24, %s1310_s5  ;;  %s1315_s8 = sshll.u32 %s1371_s6, 4  ;;  %s1316_s8 = int_to_ptr.vmem [resolvable:$false] %s1315_s8 }
  0x3b   : > { %s1317_s9 = scalar_lea.vmem %s1316_s8, 4096  ;;  %p1318_p3 = scmp.lt.s32.totalorder %s1480_s24, %s1316_s8 }
  0x3c   : > { %p1313_p0 = pnand %p1311_p13, %p1299_p6  ;;  %p1319_p9 = scmp.lt.s32.totalorder %s1317_s9, %s1310_s5 }
  0x3e   : > { %p1314_p2 = pneg %p1313_p0  ;;  %p1320_p4 = por %p1319_p9, %p1318_p3 }
  0x40   : > { %p1321_p5 = pnand %p1320_p4, %p1314_p2 }
  0x42   : > { %1324 = shalt.err (!%p1321_p5)
}
  0x43   : > { %s1372_s11 = smov 256   ;;  %s1373_s12 = smov 16  }
  0x44   : > { %1118 = dma.hbm_to_vmem [thread:$0]  (!%p1476_p7), %s1474_s22, 2048, %s1480_s24, %s1482_s26, %s1372_s11, %s1372_s11, %s1373_s12  }
  0x45   : > { %p1653_p6 = scmp.ne.s32.totalorder %s1650_s18, 0 }
  0x46   : > { %s180_s19 = sand.u32 (!%p1653_p6), 1, %s1355_s13   ;;  %p1654_p4 = scmp.ne.s32.totalorder (!%p1653_p6), %s1649_s17, 0 }
  0x47   : > { %178 = sbr.rel (%p1653_p6) target bundleno = 1113 (0x459), region = 32  ;;  %s993_s20 = sshll.u32 (!%p1653_p6), %s180_s19, 7 }
  0x48   : > { %s181_s21 = scalar_lea.sflag (!%p1653_p6), [#allocation3], %s180_s19  ;;  %s1506_s23 = scalar_lea.vmem (!%p1653_p6), [#allocation2], %s993_s20 }
  0x4c   : > { %1342 = dma.done.wait (%p1654_p4), %s181_s21, 2048  }
  0x4d   : > { %1344 = vsyncadd (%p1654_p4), %s181_s21, 4294965248  ;;  %p1655_p5 = scmp.eq.s32.totalorder %s1414_s16, 0 }
  0x4f   : > { %1346 = dma.done.wait (%p1655_p5), [#allocation5], 5632   ;;  %p1656_p7 = pmov %p1655_p5 }
  0x50   : > { %v1165_v0 = vld [vmem:[#allocation4 + $0xac] ss:$12 sps:$4 sm:$0xff]   ;;  %v1167_v1 = vld [vmem:[#allocation4 + $0xa8] ss:$12 sps:$4 sm:$0xff]   ;;  %v1170_v3 = vld [vmem:[#allocation4 + $0x90] ss:$12 sps:$4 sm:$0xff]  }
  0x51   : > { %1348 = vsyncadd (%p1656_p7), [#allocation5], 4294961664  ;;  %506 = vmatprep.subr.bf16.mxu0 %v1165_v0  ;;  %v1168_v2 = vld [vmem:[#allocation4 + $0x94] ss:$12 sps:$4 sm:$0xff]   ;;  %v1171_v4 = vld [vmem:[#allocation4 + $0x7c] ss:$12 sps:$4 sm:$0xff]  }
  0x52   : > { %507 = vmatpush1.bf16.msra.mxu0 %v1167_v1  ;;  %v1173_v5 = vld [vmem:[#allocation4 + $0x78] ss:$12 sps:$4 sm:$0xff]   ;;  %v1176_v7 = vld [vmem:[#allocation4 + $0x60] ss:$12 sps:$4 sm:$0xff]   ;;  %v1179_v9 = vld [vmem:[#allocation4 + $0x48] ss:$12 sps:$4 sm:$0xff]  }
  0x53   : > { %508 = vmatprep.subr.bf16.mxu0 %v1168_v2  ;;  %v1174_v6 = vld [vmem:[#allocation4 + $0x64] ss:$12 sps:$4 sm:$0xff]   ;;  %v1177_v8 = vld [vmem:[#allocation4 + $0x4c] ss:$12 sps:$4 sm:$0xff]   ;;  %v1180_v10 = vld [vmem:[#allocation4 + $0x34] ss:$12 sps:$4 sm:$0xff]  }
  0x54   : > { %v222_v11 = vld [vmem:[%s1506_s23 + $0x8] sm:$0xff]  ;;  %v224_v12 = vld [vmem:[%s1506_s23 + $0x18] sm:$0xff]  ;;  %vm493_vm0 = vcmask 523264   ;;  %v1186_v17 = vld [vmem:[#allocation4 + $0x4] ss:$12 sps:$4 sm:$0xff]   ;;  %v1374_v49 = vmov 0  }
  0x55   : > { %v238_v13 = vpack.c.bf16 %v224_v12, %v222_v11  ;;  %v1182_v14 = vld [vmem:[#allocation4 + $0x30] ss:$12 sps:$4 sm:$0xff]   ;;  %v1185_v16 = vld [vmem:[#allocation4 + $0x18] ss:$12 sps:$4 sm:$0xff]   ;;  %v1188_v18 = vld [vmem:[#allocation4] ss:$12 sps:$4 sm:$0xff]   ;;  %579 = vmatprep.subr.bf16.mxu1 %v1374_v49 }
  0x56   : > { %509 = vmatpush1.bf16.msra.mxu0 %v1170_v3  ;;  %v1183_v15 = vld [vmem:[#allocation4 + $0x1c] ss:$12 sps:$4 sm:$0xff]   ;;  %v1189_v19 = vld [vmem:[#allocation4 + $0x10c] ss:$12 sps:$4 sm:$0xff]   ;;  %v1192_v21 = vld [vmem:[#allocation4 + $0xf4] ss:$12 sps:$4 sm:$0xff]  }
  0x57   : > { %510 = vmatprep.subr.bf16.mxu0 %v1171_v4  ;;  %1034 = vmatprep.mubr.msk.bf16.mxu0 %vm493_vm0, %v238_v13  ;;  %v1191_v20 = vld [vmem:[#allocation4 + $0x108] ss:$12 sps:$4 sm:$0xff]   ;;  %v1194_v22 = vld [vmem:[#allocation4 + $0xf0] ss:$12 sps:$4 sm:$0xff]   ;;  %v1197_v24 = vld [vmem:[#allocation4 + $0xd8] ss:$12 sps:$4 sm:$0xff]  }
  0x58   : > { %1038 = vmatprep.mubr.msk.bf16.mxu1 %vm493_vm0, %v238_v13  ;;  %v1195_v23 = vld [vmem:[#allocation4 + $0xdc] ss:$12 sps:$4 sm:$0xff]   ;;  %v1198_v25 = vld [vmem:[#allocation4 + $0xc4] ss:$12 sps:$4 sm:$0xff]   ;;  %v1200_v26 = vld [vmem:[#allocation4 + $0xc0] ss:$12 sps:$4 sm:$0xff]  }
  0x59   : > { %v221_v27 = vld [vmem:[%s1506_s23] sm:$0xff]  ;;  %v223_v28 = vld [vmem:[%s1506_s23 + $0x10] sm:$0xff]  ;;  %v226_v29 = vld [vmem:[%s1506_s23 + $0x28] sm:$0xff]  ;;  %p215_p10 = scmp.lt.s32.totalorder %s1414_s16, 1 }
  0x5a   : > { %511 = vmatpush1.bf16.msra.mxu0 %v1173_v5  ;;  %v228_v30 = vld [vmem:[%s1506_s23 + $0x38] sm:$0xff]  ;;  %v1524_v31 = vpack.c.bf16 %v223_v28, %v221_v27  ;;  %v225_v33 = vld [vmem:[%s1506_s23 + $0x20] sm:$0xff]  ;;  %v227_v34 = vld [vmem:[%s1506_s23 + $0x30] sm:$0xff] }
  0x5b   : > { %512 = vmatprep.subr.bf16.mxu0 %v1174_v6  ;;  %v1526_v32 = vpack.c.bf16 %v228_v30, %v226_v29  ;;  %v230_v35 = vld [vmem:[%s1506_s23 + $0x48] sm:$0xff]  ;;  %v232_v36 = vld [vmem:[%s1506_s23 + $0x58] sm:$0xff]  ;;  %v1535_v37 = vpack.c.bf16 %v227_v34, %v225_v33  ;;  %v229_v39 = vld [vmem:[%s1506_s23 + $0x40] sm:$0xff]  ;;  %s1662_s16 = smov (!%p215_p10, %s1414_s16), 1 }
  0x5c   : > { %v1537_v38 = vpack.c.bf16 %v232_v36, %v230_v35  ;;  %v231_v40 = vld [vmem:[%s1506_s23 + $0x50] sm:$0xff]  ;;  %v234_v41 = vld [vmem:[%s1506_s23 + $0x68] sm:$0xff]  ;;  %v236_v42 = vld [vmem:[%s1506_s23 + $0x78] sm:$0xff]  ;;  %s1049_s17 = sshll.u32 %s1662_s16, 6 }
  0x5d   : > { %v1546_v43 = vpack.c.bf16 %v231_v40, %v229_v39  ;;  %v1548_v44 = vpack.c.bf16 %v236_v42, %v234_v41  ;;  %v233_v45 = vld [vmem:[%s1506_s23 + $0x60] sm:$0xff]  ;;  %v235_v46 = vld [vmem:[%s1506_s23 + $0x70] sm:$0xff]  ;;  %v294_v30 = vld [vmem:[#allocation6 + $0x8] sm:$0xff]  ;;  %s219_s24 = scalar_lea.vmem %s1645_s3, %s1049_s17 }
  0x5e   : > { %513 = vmatpush1.bf16.msra.mxu0 %v1176_v7  ;;  %v1555_v47 = vpack.c.bf16 %v235_v46, %v233_v45  ;;  %v1201_v48 = vld [vmem:[#allocation4 + $0xb0] ss:$12 sps:$4 sm:$0xff]   ;;  %v1202_v50 = vld [vmem:[#allocation4 + $0x98] ss:$12 sps:$4 sm:$0xff]   ;;  %v1203_v51 = vld [vmem:[#allocation4 + $0x80] ss:$12 sps:$4 sm:$0xff]  }
  0x5f   : > { %514 = vmatprep.subr.bf16.mxu0 %v1177_v8  ;;  %580 = vmatpush1.bf16.msra.mxu1 %v1201_v48  ;;  %v1204_v52 = vld [vmem:[#allocation4 + $0x68] ss:$12 sps:$4 sm:$0xff]   ;;  %v1205_v53 = vld [vmem:[#allocation4 + $0x50] ss:$12 sps:$4 sm:$0xff]  }
  0x60   : > { %581 = vmatprep.subr.bf16.mxu1 %v1374_v49  ;;  %v299_v39 = vld [vmem:[#allocation6 + $0x30] sm:$0xff]  ;;  %v300_v46 = vld [vmem:[#allocation6 + $0x38] sm:$0xff] }
  0x62   : > { %515 = vmatpush1.bf16.msra.mxu0 %v1179_v9 }
  0x63   : > { %516 = vmatprep.subr.bf16.mxu0 %v1180_v10  ;;  %582 = vmatpush1.bf16.msra.mxu1 %v1202_v50 }
  0x64   : > { %583 = vmatprep.subr.bf16.mxu1 %v1374_v49 }
  0x66   : > { %517 = vmatpush1.bf16.msra.mxu0 %v1182_v14  ;;  %v1206_v14 = vld [vmem:[#allocation4 + $0x38] ss:$12 sps:$4 sm:$0xff]  }
  0x67   : > { %518 = vmatprep.subr.bf16.mxu0 %v1183_v15  ;;  %584 = vmatpush1.bf16.msra.mxu1 %v1203_v51  ;;  %v1207_v15 = vld [vmem:[#allocation4 + $0x20] ss:$12 sps:$4 sm:$0xff]  }
  0x68   : > { %585 = vmatprep.subr.bf16.mxu1 %v1374_v49 }
  0x6a   : > { %519 = vmatpush1.bf16.msra.mxu0 %v1185_v16  ;;  %v1208_v16 = vld [vmem:[#allocation4 + $0x8] ss:$12 sps:$4 sm:$0xff]  }
  0x6b   : > { %520 = vmatprep.subr.bf16.mxu0 %v1186_v17  ;;  %586 = vmatpush1.bf16.msra.mxu1 %v1204_v52  ;;  %v1209_v17 = vld [vmem:[#allocation4 + $0x110] ss:$12 sps:$4 sm:$0xff]  }
  0x6c   : > { %587 = vmatprep.subr.bf16.mxu1 %v1374_v49 }
  0x6e   : > { %521 = vmatpush1.bf16.msra.mxu0 %v1188_v18  ;;  %v1210_v18 = vld [vmem:[#allocation4 + $0xf8] ss:$12 sps:$4 sm:$0xff]  }
  0x6f   : > { %530 = vmatprep.subr.bf16.mxu0 %v1189_v19  ;;  %588 = vmatpush1.bf16.msra.mxu1 %v1205_v53  ;;  %v1211_v19 = vld [vmem:[#allocation4 + $0xe0] ss:$12 sps:$4 sm:$0xff]  }
  0x70   : > { %589 = vmatprep.subr.bf16.mxu1 %v1374_v49 }
  0x72   : > { %531 = vmatpush2.bf16.msra.mxu0 %v1191_v20  ;;  %v1212_v20 = vld [vmem:[#allocation4 + $0xc8] ss:$12 sps:$4 sm:$0xff]  }
  0x73   : > { %532 = vmatprep.subr.bf16.mxu0 %v1192_v21  ;;  %590 = vmatpush1.bf16.msra.mxu1 %v1206_v14  ;;  %v295_v21 = vld [vmem:[#allocation6 + $0x10] sm:$0xff] }
  0x74   : > { %591 = vmatprep.subr.bf16.mxu1 %v1374_v49 }
  0x76   : > { %533 = vmatpush2.bf16.msra.mxu0 %v1194_v22 }
  0x77   : > { %534 = vmatprep.subr.bf16.mxu0 %v1195_v23  ;;  %592 = vmatpush1.bf16.msra.mxu1 %v1207_v15  ;;  %v293_v23 = vld [vmem:[#allocation6] sm:$0xff] }
  0x78   : > { %593 = vmatprep.subr.bf16.mxu1 %v1374_v49 }
  0x7a   : > { %535 = vmatpush2.bf16.msra.mxu0 %v1197_v24 }
  0x7b   : > { %536 = vmatprep.subr.bf16.mxu0 %v1198_v25  ;;  %594 = vmatpush1.bf16.msra.mxu1 %v1208_v16 }
  0x7c   : > { %603 = vmatprep.subr.bf16.mxu1 %v1374_v49 }
  0x7e   : > { %537 = vmatpush2.bf16.msra.mxu0 %v1200_v26  ;;  %v296_v26 = vld [vmem:[#allocation6 + $0x18] sm:$0xff] }
  0x7f   : > { %604 = vmatpush2.bf16.msra.mxu1 %v1209_v17 }
  0x80   : > { %605 = vmatprep.subr.bf16.mxu1 %v1374_v49 }
  0x81   : > { %539 = vmatmul.mubr.bf16.vlgmr.msra.gmra.mxu0 %v1524_v31 }
  0x82   : > { %1035 = vmatprep.mubr.msk.bf16.mxu0 %vm493_vm0, %v1526_v32 }
  0x83   : > { %606 = vmatpush2.bf16.msra.mxu1 %v1210_v18 }
  0x84   : > { %607 = vmatprep.subr.bf16.mxu1 %v1374_v49 }
  0x87   : > { %608 = vmatpush2.bf16.msra.mxu1 %v1211_v19 }
  0x88   : > { %609 = vmatprep.subr.bf16.mxu1 %v1374_v49 }
  0x89   : > { %549 = vmatmul.mubr.bf16.gmra.mxu0 %v1535_v37 }
  0x8a   : > { %1036 = vmatprep.mubr.msk.bf16.mxu0 %vm493_vm0, %v1537_v38 }
  0x8b   : > { %610 = vmatpush2.bf16.msra.mxu1 %v1212_v20 }
  0x8e   : > { %612 = vmatmul.mubr.bf16.vlgmr.msra.gmra.mxu1 %v1524_v31 }
  0x8f   : > { %1039 = vmatprep.mubr.msk.bf16.mxu1 %vm493_vm0, %v1526_v32 }
  0x91   : > { %559 = vmatmul.mubr.bf16.gmra.mxu0 %v1546_v43 }
  0x92   : > { %1037 = vmatprep.mubr.msk.bf16.mxu0 %vm493_vm0, %v1548_v44 }
  0x96   : > { %620 = vmatmul.mubr.bf16.gmra.mxu1 %v1535_v37  ;;  %v297_v37 = vld [vmem:[#allocation6 + $0x20] sm:$0xff] }
  0x97   : > { %1040 = vmatprep.mubr.msk.bf16.mxu1 %vm493_vm0, %v1537_v38 }
  0x99   : > { %569 = vmatmul.mubr.bf16.gmra.mxu0 %v1555_v47 }
  0x9e   : > { %628 = vmatmul.mubr.bf16.gmra.mxu1 %v1546_v43  ;;  %v298_v43 = vld [vmem:[#allocation6 + $0x28] sm:$0xff] }
  0x9f   : > { %1041 = vmatprep.mubr.msk.bf16.mxu1 %vm493_vm0, %v1548_v44 }
  0xa6   : > { %636 = vmatmul.mubr.bf16.gmra.mxu1 %v1555_v47 }
 0x141   : > { %v540_v54 = vpop.f32.mrf.mxu0 }
 0x143   : > { %v542_v55 = vpop.f32.mrf.mxu0 }
 0x145   : > { %v544_v56 = vpop.f32.mrf.mxu0 }
 0x146   : > { %v644_v57 = vpack.c.bf16 %v544_v56, %v540_v54 }
 0x147   : > { %v546_v58 = vpop.f32.mrf.mxu0 }
 0x148   : > { %1074 = vmatprep.mubr.bf16.mxu0 %v644_v57  ;;  %v648_v10 = vpack.c.bf16 %v546_v58, %v542_v55 }
 0x149   : > { %v550_v59 = vpop.f32.mrf.mxu0 }
 0x14b   : > { %v552_v60 = vpop.f32.mrf.mxu0 }
 0x14d   : > { %v554_v61 = vpop.f32.mrf.mxu0 }
 0x14e   : > { %v645_v11 = vpack.c.bf16 %v554_v61, %v550_v59  ;;  %v613_v53 = vpop.f32.mrf.mxu1 }
 0x14f   : > { %v556_v62 = vpop.f32.mrf.mxu0 }
 0x150   : > { %v649_v9 = vpack.c.bf16 %v556_v62, %v552_v60  ;;  %v615_v54 = vpop.f32.mrf.mxu1 }
 0x151   : > { %v560_v63 = vpop.f32.mrf.mxu0 }
 0x152   : > { %v616_v55 = vpop.f32.mrf.mxu1 }
 0x153   : > { %v562_v0 = vpop.f32.mrf.mxu0 }
 0x154   : > { %v618_v56 = vpop.f32.mrf.mxu1 }
 0x155   : > { %v564_v1 = vpop.f32.mrf.mxu0 }
 0x156   : > { %v646_v12 = vpack.c.bf16 %v564_v1, %v560_v63  ;;  %v621_v57 = vpop.f32.mrf.mxu1 }
 0x157   : > { %v566_v2 = vpop.f32.mrf.mxu0 }
 0x158   : > { %v650_v8 = vpack.c.bf16 %v566_v2, %v562_v0  ;;  %v623_v58 = vpop.f32.mrf.mxu1 }
 0x159   : > { %v570_v3 = vpop.f32.mrf.mxu0 }
 0x15a   : > { %v624_v59 = vpop.f32.mrf.mxu1 }
 0x15b   : > { %v572_v4 = vpop.f32.mrf.mxu0 }
 0x15c   : > { %v626_v60 = vpop.f32.mrf.mxu1 }
 0x15d   : > { %v574_v5 = vpop.f32.mrf.mxu0 }
 0x15e   : > { %v647_v13 = vpack.c.bf16 %v574_v5, %v570_v3  ;;  %v629_v61 = vpop.f32.mrf.mxu1 }
 0x15f   : > { %v576_v6 = vpop.f32.mrf.mxu0 }
 0x160   : > { %v651_v7 = vpack.c.bf16 %v576_v6, %v572_v4  ;;  %v631_v62 = vpop.f32.mrf.mxu1 }
 0x162   : > { %1066 = vmatprep.subr.bf16.mxu0 %v651_v7  ;;  %v632_v63 = vpop.f32.mrf.mxu1 }
 0x163   : > { %1067 = vmatpush3.bf16.xpose.msra.mxu0 %v651_v7  ;;  %v654_v4 = vpack.c.bf16 %v632_v63, %v629_v61  ;;  %v653_v7 = vpack.c.bf16 %v624_v59, %v621_v57 }
 0x164   : > { %1068 = vmatprep.subr.bf16.mxu0 %v650_v8  ;;  %v634_v0 = vpop.f32.mrf.mxu1 }
 0x166   : > { %v637_v1 = vpop.f32.mrf.mxu1 }
 0x168   : > { %v639_v2 = vpop.f32.mrf.mxu1 }
 0x16a   : > { %v640_v3 = vpop.f32.mrf.mxu1 }
 0x16b   : > { %1069 = vmatpush3.bf16.xpose.msra.mxu0 %v650_v8  ;;  %v655_v5 = vpack.c.bf16 %v640_v3, %v637_v1  ;;  %v652_v8 = vpack.c.bf16 %v616_v55, %v613_v53 }
 0x16c   : > { %1070 = vmatprep.subr.bf16.mxu0 %v649_v9  ;;  %v642_v6 = vpop.f32.mrf.mxu1 }
 0x16d   : > { %1082 = vmatprep.subr.bf16.mxu1 %v655_v5 }
 0x16e   : > { %1083 = vmatpush3.bf16.msra.mxu1 %v655_v5 }
 0x16f   : > { %1084 = vmatprep.subr.bf16.mxu1 %v654_v4 }
 0x172   : > { %1085 = vmatpush3.bf16.msra.mxu1 %v654_v4 }
 0x173   : > { %1071 = vmatpush3.bf16.xpose.msra.mxu0 %v649_v9  ;;  %1086 = vmatprep.subr.bf16.mxu1 %v653_v7 }
 0x174   : > { %1072 = vmatprep.subr.bf16.mxu0 %v648_v10 }
 0x176   : > { %1087 = vmatpush3.bf16.msra.mxu1 %v653_v7 }
 0x177   : > { %1088 = vmatprep.subr.bf16.mxu1 %v652_v8 }
 0x17a   : > { %1089 = vmatpush3.bf16.msra.mxu1 %v652_v8 }
 0x17b   : > { %1073 = vmatpush3.bf16.xpose.msra.mxu0 %v648_v10 }
 0x182   : > { %1075 = vmatmul.mubr.bf16.vlgmr.msra.gmra.mxu0 %v645_v11 }
 0x183   : > { %1078 = vmatprep.mubr.bf16.mxu0 %v646_v12 }
 0x18a   : > { %1079 = vmatmul.mubr.bf16.gmra.mxu0 %v647_v13 }
 0x242   : > { %v1076_v22 = vpop.f32.mrf.mxu0 }
 0x243   : > { %v1580_v24 = vadd.f32 %v1076_v22, %v295_v21 }
 0x244   : > { %v690_v25 = vpop.f32.mrf.mxu0 }
 0x245   : > { %v1582_v27 = vadd.f32 %v690_v25, %v293_v23  ;;  %v727_v28 = vsel %vm493_vm0, %v1580_v24, -inf }
 0x246   : > { %728 = vmax.xlane.f32.xlu1 %v727_v28  ;;  %v1077_v29 = vpop.f32.mrf.mxu0 }
 0x247   : > { %v1586_v31 = vadd.f32 %v1077_v29, %v296_v26  ;;  %v721_v32 = vsel %vm493_vm0, %v1582_v27, -inf }
 0x248   : > { %v693_v33 = vpop.f32.mrf.mxu0  ;;  %722 = vmax.xlane.f32.xlu0 %v721_v32 }
 0x249   : > { %v1590_v34 = vadd.f32 %v693_v33, %v294_v30  ;;  %v730_v35 = vsel %vm493_vm0, %v1586_v31, -inf }
 0x24a   : > { %731 = vmax.xlane.f32.xlu1 %v730_v35  ;;  %v1080_v36 = vpop.f32.mrf.mxu0 }
 0x24b   : > { %v724_v38 = vsel %vm493_vm0, %v1590_v34, -inf  ;;  %v1596_v44 = vadd.f32 %v1080_v36, %v299_v39 }
 0x24c   : > { %v706_v40 = vpop.f32.mrf.mxu0  ;;  %725 = vmax.xlane.f32.xlu0 %v724_v38 }
 0x24d   : > { %v707_v41 = vadd.f32 %v706_v40, %v297_v37  ;;  %v739_v51 = vsel %vm493_vm0, %v1596_v44, -inf }
 0x24e   : > { %v1081_v42 = vpop.f32.mrf.mxu0 }
 0x24f   : > { %v733_v45 = vsel %vm493_vm0, %v707_v41, -inf  ;;  %v1599_v49 = vadd.f32 %v1081_v42, %v300_v46 }
 0x250   : > { %v709_v47 = vpop.f32.mrf.mxu0  ;;  %734 = vmax.xlane.f32.xlu0 %v733_v45 }
 0x251   : > { %v710_v48 = vadd.f32 %v709_v47, %v298_v43  ;;  %v742_v52 = vsel %vm493_vm0, %v1599_v49, -inf }
 0x253   : > { %v736_v50 = vsel %vm493_vm0, %v710_v48, -inf }
 0x254   : > { %737 = vmax.xlane.f32.xlu1 %v736_v50  ;;  %740 = vmax.xlane.f32.xlu0 %v739_v51 }
 0x258   : > { %743 = vmax.xlane.f32.xlu1 %v742_v52 }
 0x2cf   : > { %v729_v9 = vpop.xlane.xlu1 %728 }
 0x2d0   : > { %v747_v10 = vsub.f32 %v1580_v24, %v729_v9 }
 0x2d1   : > { %v723_v11 = vpop.xlane.xlu0 %722 }
 0x2d2   : > { %v745_v12 = vsub.f32 %v1582_v27, %v723_v11  ;;  %v757_v14 = vmul.f32 1.442695, %v747_v10 }
 0x2d3   : > { %v732_v13 = vpop.xlane.xlu1 %731 }
 0x2d4   : > { %v753_v15 = vmul.f32 1.442695, %v745_v12  ;;  %v748_v16 = vsub.f32 %v1586_v31, %v732_v13 }
 0x2d5   : > { %v726_v17 = vpop.xlane.xlu0 %725 }
 0x2d6   : > { %1213 = vpow2.f32 %v753_v15  ;;  %v746_v18 = vsub.f32 %v1590_v34, %v726_v17  ;;  %v759_v19 = vmul.f32 1.442695, %v748_v16 }
 0x2d7   : > { %1215 = vpow2.f32 %v757_v14 }
 0x2d8   : > { %v755_v20 = vmul.f32 1.442695, %v746_v18 }
 0x2d9   : > { %v735_v21 = vpop.xlane.xlu0 %734 }
 0x2da   : > { %1217 = vpow2.f32 %v755_v20  ;;  %v749_v22 = vsub.f32 %v707_v41, %v735_v21 }
 0x2db   : > { %1219 = vpow2.f32 %v759_v19 }
 0x2dc   : > { %v761_v23 = vmul.f32 1.442695, %v749_v22 }
 0x2dd   : > { %v738_v24 = vpop.xlane.xlu1 %737  ;;  %v741_v25 = vpop.xlane.xlu0 %740 }
 0x2de   : > { %1221 = vpow2.f32 %v761_v23  ;;  %v750_v26 = vsub.f32 %v710_v48, %v738_v24  ;;  %v751_v27 = vsub.f32 %v1596_v44, %v741_v25 }
 0x2e0   : > { %v763_v28 = vmul.f32 1.442695, %v750_v26  ;;  %v765_v29 = vmul.f32 1.442695, %v751_v27 }
 0x2e1   : > { %v744_v30 = vpop.xlane.xlu1 %743 }
 0x2e2   : > { %1223 = vpow2.f32 %v763_v28  ;;  %v752_v31 = vsub.f32 %v1599_v49, %v744_v30 }
 0x2e3   : > { %v1214_v32 = vpop.eup %1213  ;;  %1225 = vpow2.f32 %v765_v29 }
 0x2e4   : > { %v767_v33 = vmul.f32 1.442695, %v752_v31  ;;  %v769_v34 = vsel %vm493_vm0, %v1214_v32, 0.0  ;;  %v1216_v35 = vpop.eup %1215 }
 0x2e5   : > { %770 = vadd.xlane.f32.xlu0 %v769_v34  ;;  %v775_v37 = vsel %vm493_vm0, %v1216_v35, 0.0 }
 0x2e6   : > { %1227 = vpow2.f32 %v767_v33 }
 0x2e7   : > { %v1218_v36 = vpop.eup %1217 }
 0x2e8   : > { %v772_v38 = vsel %vm493_vm0, %v1218_v36, 0.0  ;;  %v1220_v39 = vpop.eup %1219 }
 0x2e9   : > { %776 = vadd.xlane.f32.xlu0 %v775_v37  ;;  %773 = vadd.xlane.f32.xlu1 %v772_v38  ;;  %v778_v41 = vsel %vm493_vm0, %v1220_v39, 0.0 }
 0x2eb   : > { %v1222_v40 = vpop.eup %1221 }
 0x2ec   : > { %v781_v42 = vsel %vm493_vm0, %v1222_v40, 0.0 }
 0x2ed   : > { %779 = vadd.xlane.f32.xlu1 %v778_v41  ;;  %782 = vadd.xlane.f32.xlu0 %v781_v42 }
 0x2ef   : > { %v1224_v43 = vpop.eup %1223 }
 0x2f0   : > { %v1226_v44 = vpop.eup %1225  ;;  %v784_v45 = vsel %vm493_vm0, %v1224_v43, 0.0 }
 0x2f1   : > { %785 = vadd.xlane.f32.xlu1 %v784_v45  ;;  %v787_v46 = vsel %vm493_vm0, %v1226_v44, 0.0 }
 0x2f2   : > { %788 = vadd.xlane.f32.xlu0 %v787_v46 }
 0x2f3   : > { %v1228_v47 = vpop.eup %1227 }
 0x2f4   : > { %v790_v48 = vsel %vm493_vm0, %v1228_v47, 0.0 }
 0x2f5   : > { %791 = vadd.xlane.f32.xlu1 %v790_v48 }
 0x36e   : > { %v771_v49 = vpop.xlane.xlu0 %770 }
 0x36f   : > { %1229 = vrcp.f32 %v771_v49 }
 0x372   : > { %v774_v50 = vpop.xlane.xlu1 %773  ;;  %v777_v51 = vpop.xlane.xlu0 %776 }
 0x373   : > { %1231 = vrcp.f32 %v774_v50 }
 0x374   : > { %1233 = vrcp.f32 %v777_v51 }
 0x376   : > { %v780_v52 = vpop.xlane.xlu1 %779  ;;  %v783_v53 = vpop.xlane.xlu0 %782 }
 0x377   : > { %1235 = vrcp.f32 %v780_v52 }
 0x378   : > { %1237 = vrcp.f32 %v783_v53 }
 0x37a   : > { %v786_v54 = vpop.xlane.xlu1 %785 }
 0x37b   : > { %1239 = vrcp.f32 %v786_v54  ;;  %v789_v55 = vpop.xlane.xlu0 %788 }
 0x37c   : > { %1241 = vrcp.f32 %v789_v55  ;;  %v1230_v56 = vpop.eup %1229 }
 0x37d   : > { %v801_v59 = vmul.f32 %v1230_v56, %v1214_v32 }
 0x37e   : > { %v792_v57 = vpop.xlane.xlu1 %791 }
 0x37f   : > { %1243 = vrcp.f32 %v792_v57 }
 0x380   : > { %v1232_v58 = vpop.eup %1231 }
 0x381   : > { %v802_v60 = vmul.f32 %v1232_v58, %v1218_v36  ;;  %v1234_v61 = vpop.eup %1233 }
 0x382   : > { %v803_v0 = vmul.f32 %v1234_v61, %v1216_v35 }
 0x383   : > { %v809_v62 = vpack.c.bf16 %v802_v60, %v801_v59 }
 0x384   : > { %v1236_v63 = vpop.eup %1235 }
 0x385   : > { %v804_v1 = vmul.f32 %v1236_v63, %v1220_v39  ;;  %1090 = vmatprep.mubr.msk.bf16.mxu1 %vm493_vm0, %v809_v62  ;;  %v1238_v2 = vpop.eup %1237 }
 0x386   : > { %v805_v5 = vmul.f32 %v1238_v2, %v1222_v40 }
 0x387   : > { %v810_v3 = vpack.c.bf16 %v804_v1, %v803_v0 }
 0x388   : > { %v1240_v4 = vpop.eup %1239 }
 0x389   : > { %1091 = vmatmul.mubr.msk.bf16.vlgmr.msra.gmra.mxu1 %vm493_vm0, %v810_v3  ;;  %v806_v6 = vmul.f32 %v1240_v4, %v1224_v43  ;;  %v1242_v7 = vpop.eup %1241 }
 0x38a   : > { %v807_v10 = vmul.f32 %v1242_v7, %v1226_v44 }
 0x38b   : > { %v811_v8 = vpack.c.bf16 %v806_v6, %v805_v5 }
 0x38c   : > { %v1244_v9 = vpop.eup %1243 }
 0x38d   : > { %1094 = vmatprep.mubr.msk.bf16.mxu1 %vm493_vm0, %v811_v8  ;;  %v808_v11 = vmul.f32 %v1244_v9, %v1228_v47 }
 0x38f   : > { %v812_v12 = vpack.c.bf16 %v808_v11, %v807_v10 }
 0x391   : > { %1095 = vmatmul.mubr.msk.bf16.gmra.mxu1 %vm493_vm0, %v812_v12 }
 0x449   : > { %v1092_v13 = vpop.f32.mrf.mxu1 }
 0x44a   : > { %892 = vst [vmem:[%s219_s24 + $0x10] sm:$0xff] %v1092_v13 }
 0x44b   : > { %v859_v14 = vpop.f32.mrf.mxu1 }
 0x44c   : > { %890 = vst [vmem:[%s219_s24] sm:$0xff] %v859_v14 }
 0x44d   : > { %v1093_v15 = vpop.f32.mrf.mxu1 }
 0x44e   : > { %893 = vst [vmem:[%s219_s24 + $0x18] sm:$0xff] %v1093_v15 }
 0x44f   : > { %v862_v16 = vpop.f32.mrf.mxu1 }
 0x450   : > { %891 = vst [vmem:[%s219_s24 + $0x8] sm:$0xff] %v862_v16 }
 0x451   : > { %v1096_v17 = vpop.f32.mrf.mxu1 }
 0x452   : > { %896 = vst [vmem:[%s219_s24 + $0x30] sm:$0xff] %v1096_v17 }
 0x453   : > { %v875_v18 = vpop.f32.mrf.mxu1 }
 0x454   : > { %894 = vst [vmem:[%s219_s24 + $0x20] sm:$0xff] %v875_v18 }
 0x455   : > { %v1097_v19 = vpop.f32.mrf.mxu1 }
 0x456   : > { %897 = vst [vmem:[%s219_s24 + $0x38] sm:$0xff] %v1097_v19 }
 0x457   : > { %v878_v20 = vpop.f32.mrf.mxu1 }
 0x458   : > { %895 = vst [vmem:[%s219_s24 + $0x28] sm:$0xff] %v878_v20 }
 0x459 PF: > { %p14_p12 = scmp.ge.s32.totalorder %s1457_s7, 4   ;;  %s1657_s12 = smov %s1355_s13 }
 0x45a   : > { %s1658_s13 = smov %s1359_s14  ;;  %s1659_s14 = smov %s1466_s10 }
 0x45b   : > { %s1660_s15 = smov %s1457_s7  ;;  %16 = sbr.rel (!%p14_p12) target bundleno = 4 (0x4), region = 80 }
 0x460   :  { %919 = vsyncpa [#allocation3], 1 }
 0x461   :  { %921 = vsyncpa [#allocation3 + $0x1], 1 }
 0x462   :  { %922 = vsyncpa [#allocation5], 1 }

</bundles_post_ra>
